<compile_context>
chip_gen: v7x
topology: tpu7x:2x2x1
jax: 0.10.0
libtpu: 0.0.40
codegen_flags: <defaults>
</compile_context>

<pallas_src>
import jax
import jax.numpy as jnp
from jax import lax
from jax.experimental import pallas as pl
from jax.experimental.pallas import tpu as pltpu


def xca_kernel(x_ref, wqkv_ref, wproj_ref, bproj_ref, temp_ref, bias_ref, o_ref):
    """One group of G batch elements per grid step.

    x_ref    : (G, N, C)   input tokens (bf16)
    wqkv_ref : (C, 3C)     qkv weight, transposed (in, out), bf16
    wproj_ref: (C, C)      proj weight, transposed (in, out), bf16
    bproj_ref: (1, C)      proj bias (f32)
    temp_ref : (1, C)      per-channel temperature (per-head value repeated Ch times)
    bias_ref : (G, C, C)   additive attention bias (block-diag DropKey / -1e30)
    o_ref    : (G, N, C)   output
    """
    G, N, C = x_ref.shape

    x = x_ref[...]                                      # (G, N, C)
    x2 = x.reshape(G * N, C).astype(wqkv_ref.dtype)

    # Fused qkv projection on the merged slab: bf16 in -> f32 accumulation (MXU).
    qkv = jnp.dot(x2, wqkv_ref[...], preferred_element_type=jnp.float32)  # (G*N, 3C)

    q = qkv[:, :C].reshape(G, N, C)
    k = qkv[:, C:2 * C].reshape(G, N, C)
    v = qkv[:, 2 * C:].reshape(G, N, C)

    # Per-(batch, channel) L2 normalization over tokens == torch F.normalize
    # (dim=-1) on the per-head (Ch, N) view.  rsqrt routes to the EUP slot.
    qn = q * lax.rsqrt(jnp.maximum(jnp.sum(q * q, axis=1, keepdims=True), 1e-24))
    kn = k * lax.rsqrt(jnp.maximum(jnp.sum(k * k, axis=1, keepdims=True), 1e-24))

    # Fold the per-head temperature in as a per-channel scale on q.
    qn = qn * temp_ref[...].reshape(1, 1, C)

    # Full-C cross-covariance for all heads at once: (G, C, C), f32 accumulate.
    attn = lax.dot_general(
        qn.astype(jnp.bfloat16), kn.astype(jnp.bfloat16),
        dimension_numbers=(((1,), (1,)), ((0,), (0,))),
        preferred_element_type=jnp.float32)

    # Precomputed bias: DropKey * -1e12 inside each head block, -1e30 on
    # cross-head entries -> single softmax == per-head softmax of the reference.
    attn = attn + bias_ref[...].astype(jnp.float32)

    attn = attn - jnp.max(attn, axis=-1, keepdims=True)
    p = jnp.exp(attn)
    p = p * pl.reciprocal(jnp.sum(p, axis=-1, keepdims=True), approx=True)

    # Channel mix: out[g, n, r] = sum_c p[g, r, c] * v[g, n, c]  -> (G, N, C).
    out = lax.dot_general(
        v.astype(jnp.bfloat16), p.astype(jnp.bfloat16),
        dimension_numbers=(((2,), (2,)), ((0,), (0,))),
        preferred_element_type=jnp.float32)

    # Output projection + bias + residual on the merged slab.
    y = jnp.dot(out.reshape(G * N, C).astype(wproj_ref.dtype), wproj_ref[...],
                preferred_element_type=jnp.float32)
    y = y.reshape(G, N, C) + bproj_ref[...].astype(jnp.float32)
    y = y + x.astype(jnp.float32)
    o_ref[...] = y.astype(o_ref.dtype)


def xca_forward(x, wqkv_t, wproj_t, bproj, temperature, drop_mask,
                *, num_heads, batch_block=None):
    """x: (B, N, C); drop_mask: (B, H, Ch, Ch) bernoulli 0/1 floats."""
    B, N, C = x.shape
    H = num_heads
    assert C % H == 0
    Ch = C // H
    assert drop_mask.shape == (B, H, Ch, Ch)

    if batch_block is None:
        # At most two grid steps: keeps both v7x TensorCores busy while
        # amortizing per-step overhead on single-TC v5e / v6e.
        batch_block = B // 2 if (B >= 2 and B % 2 == 0) else 1
    assert B % batch_block == 0
    G = batch_block
    num_blocks = B // G

    # --- plain-JAX glue: combined additive attention bias --------------------
    eye_h = jnp.eye(H, dtype=jnp.float32)
    drop_full = jnp.einsum('bhij,hg->bhigj',
                           drop_mask.astype(jnp.float32), eye_h).reshape(B, C, C)
    rows = jnp.arange(C) // Ch
    same_head = rows[:, None] == rows[None, :]
    attn_bias = jnp.where(same_head[None, :, :], drop_full * (-1e12), -1e30)
    attn_bias = attn_bias.astype(jnp.bfloat16)          # halves mask DMA

    # Per-channel temperature vector (each head value repeated Ch times).
    row_temp = jnp.repeat(temperature.reshape(H).astype(jnp.float32), Ch).reshape(1, C)

    bproj2 = bproj.reshape(1, C).astype(jnp.float32)

    return pl.pallas_call(
        xca_kernel,
        out_shape=jax.ShapeDtypeStruct((B, N, C), x.dtype),
        grid=(num_blocks,),
        in_specs=[
            pl.BlockSpec((G, N, C), lambda b: (b, 0, 0)),
            pl.BlockSpec((C, 3 * C), lambda b: (0, 0)),     # grid-invariant weights
            pl.BlockSpec((C, C), lambda b: (0, 0)),
            pl.BlockSpec((1, C), lambda b: (0, 0)),
            pl.BlockSpec((1, C), lambda b: (0, 0)),
            pl.BlockSpec((G, C, C), lambda b: (b, 0, 0)),
        ],
        out_specs=pl.BlockSpec((G, N, C), lambda b: (b, 0, 0)),
        compiler_params=pltpu.CompilerParams(
            dimension_semantics=("parallel",)),
    )(x, wqkv_t, wproj_t, bproj2, row_temp, attn_bias)


def xca_reference(x, wqkv_t, wproj_t, bproj, temperature, drop_mask_4d, num_heads):
    """Plain-JAX f32 reference mirroring the PyTorch forward (same given mask)."""
    x = x.astype(jnp.float32)
    wqkv_t = wqkv_t.astype(jnp.float32)
    wproj_t = wproj_t.astype(jnp.float32)
    bproj = bproj.astype(jnp.float32)
    B, N, C = x.shape
    H = num_heads
    Ch = C // H
    qkv = x @ wqkv_t                                    # (B, N, 3C)
    qkv = qkv.reshape(B, N, 3, H, Ch).transpose(2, 0, 3, 1, 4)
    q, k, v = qkv[0], qkv[1], qkv[2]                    # (B, H, N, Ch)
    q = jnp.swapaxes(q, -2, -1)                         # (B, H, Ch, N)
    k = jnp.swapaxes(k, -2, -1)
    v = jnp.swapaxes(v, -2, -1)
    q = q / jnp.maximum(jnp.linalg.norm(q, axis=-1, keepdims=True), 1e-12)
    k = k / jnp.maximum(jnp.linalg.norm(k, axis=-1, keepdims=True), 1e-12)
    attn = jnp.einsum('bhcn,bhdn->bhcd', q, k) * temperature.reshape(1, H, 1, 1)
    attn = attn + drop_mask_4d.astype(jnp.float32) * (-1e12)
    attn = jax.nn.softmax(attn, axis=-1)
    out = jnp.einsum('bhcd,bhdn->bhcn', attn, v)        # (B, H, Ch, N)
    out = out.transpose(0, 3, 1, 2).reshape(B, N, C)
    out = out @ wproj_t + bproj.reshape(1, 1, C)
    return out + x


if __name__ == "__main__":
    # Small shapes consistent with the module: dim=C=32, num_heads=8 -> Ch=4.
    B, N, C, H = 2, 16, 32, 8
    Ch = C // H
    mask_ratio = 0.2

    key = jax.random.PRNGKey(0)
    kx, kqkv, kproj_w, kproj_b, kmask = jax.random.split(key, 5)

    # bf16 activations / weights (MXU-friendly); reference consumes the exact
    # same bf16-valued numbers upcast to f32.
    x = jax.random.normal(kx, (B, N, C), dtype=jnp.float32).astype(jnp.bfloat16)

    # nn.Linear(dim, dim*3, bias=False): weight (3C, C); pass transposed (C, 3C)
    wqkv_t = ((jax.random.normal(kqkv, (3 * C, C), dtype=jnp.float32) * 0.02).T
              ).astype(jnp.bfloat16)
    # nn.Linear(dim, dim): weight (C, C) + bias (C,); pass weight transposed
    wproj_t = ((jax.random.normal(kproj_w, (C, C), dtype=jnp.float32) * 0.02).T
               ).astype(jnp.bfloat16)
    bproj = (jax.random.normal(kproj_b, (C,), dtype=jnp.float32) * 0.02)
    # temperature parameter: ones(num_heads, 1, 1)
    temperature = jnp.ones((H,), dtype=jnp.float32)

    # DropKey bernoulli mask (the module samples this every forward; we sample
    # it deterministically from a PRNGKey(0)-derived key in the glue).
    drop_mask_4d = jax.random.bernoulli(
        kmask, mask_ratio, (B, H, Ch, Ch)).astype(jnp.float32)

    out = xca_forward(x, wqkv_t, wproj_t, bproj, temperature, drop_mask_4d,
                      num_heads=H)
    out = jax.block_until_ready(out)

    ref = xca_reference(x, wqkv_t, wproj_t, bproj, temperature, drop_mask_4d, H)

    assert out.shape == (B, N, C)
    out_f32 = out.astype(jnp.float32)
    assert jnp.all(jnp.isfinite(out_f32))
    max_err = jnp.max(jnp.abs(out_f32 - ref))
    # bf16-aware tolerance (bf16 matmul inputs + bf16 output storage).
    assert max_err < 6e-2, f"max abs err {max_err}"

    print("KERNEL_OK")
</pallas_src>

<mosaic_0001>
module attributes {stable_mosaic.version = 11 : i64} {
  func.func @xca_kernel(%arg0: i32, %arg1: memref<1x16x32xbf16, #tpu.memory_space<vmem>>, %arg2: memref<32x96xbf16, #tpu.memory_space<vmem>>, %arg3: memref<32x32xbf16, #tpu.memory_space<vmem>>, %arg4: memref<1x32xf32, #tpu.memory_space<vmem>>, %arg5: memref<1x32xf32, #tpu.memory_space<vmem>>, %arg6: memref<1x32x32xbf16, #tpu.memory_space<vmem>>, %arg7: memref<1x16x32xbf16, #tpu.memory_space<vmem>>) attributes {dimension_semantics = [#tpu.dimension_semantics<parallel>], iteration_bounds = array<i64: 2>, scalar_prefetch = 0 : i64, scratch_operands = 0 : i64, tpu.core_type = #tpu.core_type<tc>, window_params = [{transform_indices = @transform_0, window_bounds = array<i64: 1, 16, 32>}, {pipeline_mode = #tpu.pipeline_mode<synchronous>, transform_indices = @transform_1, window_bounds = array<i64: 32, 96>}, {pipeline_mode = #tpu.pipeline_mode<synchronous>, transform_indices = @transform_2, window_bounds = array<i64: 32, 32>}, {pipeline_mode = #tpu.pipeline_mode<synchronous>, transform_indices = @transform_3, window_bounds = array<i64: 1, 32>}, {pipeline_mode = #tpu.pipeline_mode<synchronous>, transform_indices = @transform_4, window_bounds = array<i64: 1, 32>}, {transform_indices = @transform_5, window_bounds = array<i64: 1, 32, 32>}, {transform_indices = @transform_6, window_bounds = array<i64: 1, 16, 32>}]} {
    %c0 = arith.constant 0 : index
    %c0_0 = arith.constant 0 : index
    %c0_1 = arith.constant 0 : index
    %0 = vector.load %arg1[%c0, %c0_0, %c0_1] : memref<1x16x32xbf16, #tpu.memory_space<vmem>>, vector<1x16x32xbf16>
    %1 = vector.shape_cast %0 : vector<1x16x32xbf16> to vector<16x32xbf16>
    %c0_2 = arith.constant 0 : index
    %c0_3 = arith.constant 0 : index
    %2 = vector.load %arg2[%c0_2, %c0_3] : memref<32x96xbf16, #tpu.memory_space<vmem>>, vector<32x96xbf16>
    %cst = arith.constant dense<0.000000e+00> : vector<16x96xf32>
    %3 = tpu.matmul %1, %2, %cst {dimension_numbers = #tpu.dot_dimension_numbers<[1], [0], [0], [1], [0, 0, 1, 1], [], []>} : vector<16x32xbf16>, vector<32x96xbf16>, vector<16x96xf32> -> vector<16x96xf32>
    %4 = vector.extract_strided_slice %3 {offsets = [0, 0], sizes = [16, 32], strides = [1, 1]} : vector<16x96xf32> to vector<16x32xf32>
    %5 = vector.shape_cast %4 : vector<16x32xf32> to vector<1x16x32xf32>
    %6 = vector.extract_strided_slice %3 {offsets = [0, 32], sizes = [16, 32], strides = [1, 1]} : vector<16x96xf32> to vector<16x32xf32>
    %7 = vector.shape_cast %6 : vector<16x32xf32> to vector<1x16x32xf32>
    %8 = vector.extract_strided_slice %3 {offsets = [0, 64], sizes = [16, 32], strides = [1, 1]} : vector<16x96xf32> to vector<16x32xf32>
    %9 = vector.shape_cast %8 : vector<16x32xf32> to vector<1x16x32xf32>
    %10 = arith.mulf %5, %5 : vector<1x16x32xf32>
    %cst_4 = arith.constant dense<0.000000e+00> : vector<1x32xf32>
    %11 = vector.multi_reduction <add>, %10, %cst_4 [1] : vector<1x16x32xf32> to vector<1x32xf32>
    %12 = vector.shape_cast %11 : vector<1x32xf32> to vector<1x1x32xf32>
    %cst_5 = arith.constant 1.000000e-24 : f32
    %13 = vector.broadcast %cst_5 : f32 to vector<1x1x32xf32>
    %14 = arith.maximumf %12, %13 : vector<1x1x32xf32>
    %15 = math.rsqrt %14 : vector<1x1x32xf32>
    %16 = vector.broadcast %15 : vector<1x1x32xf32> to vector<1x16x32xf32>
    %17 = arith.mulf %5, %16 : vector<1x16x32xf32>
    %18 = arith.mulf %7, %7 : vector<1x16x32xf32>
    %cst_6 = arith.constant dense<0.000000e+00> : vector<1x32xf32>
    %19 = vector.multi_reduction <add>, %18, %cst_6 [1] : vector<1x16x32xf32> to vector<1x32xf32>
    %20 = vector.shape_cast %19 : vector<1x32xf32> to vector<1x1x32xf32>
    %cst_7 = arith.constant 1.000000e-24 : f32
    %21 = vector.broadcast %cst_7 : f32 to vector<1x1x32xf32>
    %22 = arith.maximumf %20, %21 : vector<1x1x32xf32>
    %23 = math.rsqrt %22 : vector<1x1x32xf32>
    %24 = vector.broadcast %23 : vector<1x1x32xf32> to vector<1x16x32xf32>
    %25 = arith.mulf %7, %24 : vector<1x16x32xf32>
    %c0_8 = arith.constant 0 : index
    %c0_9 = arith.constant 0 : index
    %26 = vector.load %arg5[%c0_8, %c0_9] : memref<1x32xf32, #tpu.memory_space<vmem>>, vector<1x32xf32>
    %27 = vector.shape_cast %26 : vector<1x32xf32> to vector<1x1x32xf32>
    %28 = vector.broadcast %27 : vector<1x1x32xf32> to vector<1x16x32xf32>
    %29 = arith.mulf %17, %28 : vector<1x16x32xf32>
    %30 = arith.truncf %29 : vector<1x16x32xf32> to vector<1x16x32xbf16>
    %31 = arith.truncf %25 : vector<1x16x32xf32> to vector<1x16x32xbf16>
    %cst_10 = arith.constant dense<0.000000e+00> : vector<1x32x32xf32>
    %32 = tpu.matmul %30, %31, %cst_10 {dimension_numbers = #tpu.dot_dimension_numbers<[1], [1], [2], [2], [0, 0, 0, 2, 1, 2], [0], [0]>} : vector<1x16x32xbf16>, vector<1x16x32xbf16>, vector<1x32x32xf32> -> vector<1x32x32xf32>
    %c0_11 = arith.constant 0 : index
    %c0_12 = arith.constant 0 : index
    %c0_13 = arith.constant 0 : index
    %33 = vector.load %arg6[%c0_11, %c0_12, %c0_13] : memref<1x32x32xbf16, #tpu.memory_space<vmem>>, vector<1x32x32xbf16>
    %34 = arith.extf %33 : vector<1x32x32xbf16> to vector<1x32x32xf32>
    %35 = arith.addf %32, %34 : vector<1x32x32xf32>
    %cst_14 = arith.constant dense<0xFF800000> : vector<1x32xf32>
    %36 = vector.multi_reduction <maximumf>, %35, %cst_14 [2] : vector<1x32x32xf32> to vector<1x32xf32>
    %37 = vector.shape_cast %36 : vector<1x32xf32> to vector<1x32x1xf32>
    %38 = vector.broadcast %37 : vector<1x32x1xf32> to vector<1x32x32xf32>
    %39 = arith.subf %35, %38 : vector<1x32x32xf32>
    %40 = math.exp %39 : vector<1x32x32xf32>
    %cst_15 = arith.constant dense<0.000000e+00> : vector<1x32xf32>
    %41 = vector.multi_reduction <add>, %40, %cst_15 [2] : vector<1x32x32xf32> to vector<1x32xf32>
    %42 = vector.shape_cast %41 : vector<1x32xf32> to vector<1x32x1xf32>
    %43 = tpu.reciprocal %42 {approx = true} : vector<1x32x1xf32> -> vector<1x32x1xf32>
    %44 = vector.broadcast %43 : vector<1x32x1xf32> to vector<1x32x32xf32>
    %45 = arith.mulf %40, %44 : vector<1x32x32xf32>
    %46 = arith.truncf %9 : vector<1x16x32xf32> to vector<1x16x32xbf16>
    %47 = arith.truncf %45 : vector<1x32x32xf32> to vector<1x32x32xbf16>
    %cst_16 = arith.constant dense<0.000000e+00> : vector<1x16x32xf32>
    %48 = tpu.matmul %46, %47, %cst_16 {dimension_numbers = #tpu.dot_dimension_numbers<[2], [2], [1], [1], [0, 0, 0, 1, 1, 1], [0], [0]>} : vector<1x16x32xbf16>, vector<1x32x32xbf16>, vector<1x16x32xf32> -> vector<1x16x32xf32>
    %49 = vector.shape_cast %48 : vector<1x16x32xf32> to vector<16x32xf32>
    %50 = arith.truncf %49 : vector<16x32xf32> to vector<16x32xbf16>
    %c0_17 = arith.constant 0 : index
    %c0_18 = arith.constant 0 : index
    %51 = vector.load %arg3[%c0_17, %c0_18] : memref<32x32xbf16, #tpu.memory_space<vmem>>, vector<32x32xbf16>
    %cst_19 = arith.constant dense<0.000000e+00> : vector<16x32xf32>
    %52 = tpu.matmul %50, %51, %cst_19 {dimension_numbers = #tpu.dot_dimension_numbers<[1], [0], [0], [1], [0, 0, 1, 1], [], []>} : vector<16x32xbf16>, vector<32x32xbf16>, vector<16x32xf32> -> vector<16x32xf32>
    %53 = vector.shape_cast %52 : vector<16x32xf32> to vector<1x16x32xf32>
    %c0_20 = arith.constant 0 : index
    %c0_21 = arith.constant 0 : index
    %54 = vector.load %arg4[%c0_20, %c0_21] : memref<1x32xf32, #tpu.memory_space<vmem>>, vector<1x32xf32>
    %55 = vector.shape_cast %54 : vector<1x32xf32> to vector<1x1x32xf32>
    %56 = vector.broadcast %55 : vector<1x1x32xf32> to vector<1x16x32xf32>
    %57 = arith.addf %53, %56 : vector<1x16x32xf32>
    %58 = arith.extf %0 : vector<1x16x32xbf16> to vector<1x16x32xf32>
    %59 = arith.addf %57, %58 : vector<1x16x32xf32>
    %60 = arith.truncf %59 : vector<1x16x32xf32> to vector<1x16x32xbf16>
    %c0_22 = arith.constant 0 : index
    %c0_23 = arith.constant 0 : index
    %c0_24 = arith.constant 0 : index
    %61 = vector.load %arg7[%c0_22, %c0_23, %c0_24] : memref<1x16x32xbf16, #tpu.memory_space<vmem>>, vector<1x16x32xbf16>
    tpu.vector_store %arg7[%c0_22, %c0_23, %c0_24], %60 {strides = array<i32>} : memref<1x16x32xbf16, #tpu.memory_space<vmem>>, vector<1x16x32xbf16>,
    return
  }
  func.func @transform_0(%arg0: i32) -> (i32, i32, i32) {
    %c0_i32 = arith.constant 0 : i32
    %c0_i32_0 = arith.constant 0 : i32
    %c0_i32_1 = arith.constant 0 : i32
    return %arg0, %c0_i32, %c0_i32_0 : i32, i32, i32
  }
  func.func @transform_1(%arg0: i32) -> (i32, i32) {
    %c0_i32 = arith.constant 0 : i32
    %c0_i32_0 = arith.constant 0 : i32
    %c0_i32_1 = arith.constant 0 : i32
    return %c0_i32, %c0_i32_0 : i32, i32
  }
  func.func @transform_2(%arg0: i32) -> (i32, i32) {
    %c0_i32 = arith.constant 0 : i32
    %c0_i32_0 = arith.constant 0 : i32
    %c0_i32_1 = arith.constant 0 : i32
    return %c0_i32, %c0_i32_0 : i32, i32
  }
  func.func @transform_3(%arg0: i32) -> (i32, i32) {
    %c0_i32 = arith.constant 0 : i32
    %c0_i32_0 = arith.constant 0 : i32
    %c0_i32_1 = arith.constant 0 : i32
    return %c0_i32, %c0_i32_0 : i32, i32
  }
  func.func @transform_4(%arg0: i32) -> (i32, i32) {
    %c0_i32 = arith.constant 0 : i32
    %c0_i32_0 = arith.constant 0 : i32
    %c0_i32_1 = arith.constant 0 : i32
    return %c0_i32, %c0_i32_0 : i32, i32
  }
  func.func @transform_5(%arg0: i32) -> (i32, i32, i32) {
    %c0_i32 = arith.constant 0 : i32
    %c0_i32_0 = arith.constant 0 : i32
    %c0_i32_1 = arith.constant 0 : i32
    return %arg0, %c0_i32, %c0_i32_0 : i32, i32, i32
  }
  func.func @transform_6(%arg0: i32) -> (i32, i32, i32) {
    %c0_i32 = arith.constant 0 : i32
    %c0_i32_0 = arith.constant 0 : i32
    %c0_i32_1 = arith.constant 0 : i32
    return %arg0, %c0_i32, %c0_i32_0 : i32, i32, i32
  }
}

</mosaic_0001>

<bundles_post_ra>
// kernel: tpu_custom_call.1
= control target key start
LH: loop header
LB: loop body
LE: loop exit
PB: predicated region body
PF: predicated region fallthrough
CT: control target
= control target key end

     0   :  { %11 = vsyncpa [#allocation3], 0  ;;  %s1633_s0 = inlined_call_operand.hbm [shape: bf16[2,16,32], index: 0, kind: input, shape index: {}]   ;;  %s1634_s1 = inlined_call_operand.hbm [shape: bf16[32,96], index: 1, kind: input, shape index: {}]   ;;  %s1635_s2 = inlined_call_operand.hbm [shape: bf16[32,32], index: 2, kind: input, shape index: {}]   ;;  %s1636_s3 = inlined_call_operand.vmem [shape: f32[1,32], index: 3, kind: input, shape index: {}]   ;;  %s1637_s4 = inlined_call_operand.vmem [shape: f32[1,32], index: 4, kind: input, shape index: {}]   ;;  %s1638_s5 = inlined_call_operand.hbm [shape: bf16[2,32,32], index: 5, kind: input, shape index: {}]   ;;  %s1639_s6 = inlined_call_operand.hbm [shape: bf16[2,16,32], index: 6, kind: output, shape index: {}]  }
   0x1   :  { %13 = vsyncpa [#allocation3 + $0x1], 0 }
   0x2   :  { %14 = vsyncpa [#allocation6], 0 }
   0x3   :  { %15 = vsyncpa [#allocation9], 0 }
   0x4   :  { %17 = vsyncpa [#allocation9 + $0x1], 0 }
   0x5   :  { %18 = vsyncpa [#allocation4], 0 }
   0x6   :  { %20 = vsyncpa [#allocation4 + $0x1], 0  ;;  %s1283_s21 = smov 0   ;;  %s1285_s22 = smov 0  }
   0x7   :  { %s1287_s23 = smov 0   ;;  %s1289_s24 = smov 0  }
   0x8 LB: > { %s1304_s25 = sadd.s32 4294967295, %s1234_s24   ;;  %s846_s26 = sadd.s32 4294967294, %s1234_s24   ;;  %s1234_s24 = sphi %s1289_s24, %s1667_s24   ;;  %s1230_s23 = sphi %s1287_s23, %s1671_s23   ;;  %s1226_s22 = sphi %s1285_s22, %s1670_s22   ;;  %s1222_s21 = sphi %s1283_s21, %s1669_s21  }
   0x9   : > { %s1308_s27 = sadd.s32 1, %s1234_s24   ;;  %s33_s28 = sadd.s32 1, %s1230_s23 }
   0xa   : > { %1647 = sst [smem:[#allocation15_spill]] %s1308_s27  ;;  %s30_s29 = ssub.s32 %s1234_s24, %s1308_s27 }
   0xb   : > { %p40_p0 = scmp.ne.s32.totalorder %s1230_s23, %s1226_s22  ;;  %p31_p1 = scmp.eq.s32.totalorder %s30_s29, 0 }
   0xc   : > { %p41_p2 = scmp.eq.s32.totalorder %s1234_s24, 0  ;;  %p46_p3 = scmp.ne.s32.totalorder %s1226_s22, %s1222_s21 }
   0xd   : > { %p1640_p4 = scmp.eq.s32.totalorder %s1304_s25, 0  ;;  %p180_p7 = scmp.eq.s32.totalorder %s1304_s25, 1 }
   0xe   : > { %s1320_s30 = scalar_select %p31_p1, %s1230_s23, %s33_s28  }
   0xf   : > { %p1322_p5 = por %p41_p2, %p40_p0  ;;  %p1328_p6 = por %p1640_p4, %p46_p3 }
  0x10   : > { %1648 = sst [smem:[#allocation16_spill]] %s1320_s30  ;;  %p186_p8 = scmp.eq.s32.totalorder %s846_s26, 1 }
  0x11   : > { %s1649_s7 = scalar_select %p1322_p5, 1, 0 }
  0x12   : > { %s1650_s8 = scalar_select %p1328_p6, 1, 0 }
  0x13   : > { %p847_p9 = scmp.ge.s32.totalorder %s1234_s24, 1  ;;  %p193_p10 = scmp.lt.s32.totalorder %s1234_s24, 3 }
  0x14   : > { %p1335_p11 = por %p180_p7, %p40_p0  ;;  %p1339_p12 = por %p186_p8, %p46_p3 }
  0x15   : > { %p1343_p13 = pnand %p847_p9, %p193_p10  ;;  %s1236_s12 = smov [#allocation5]  }
  0x16   : > { %s1651_s9 = scalar_select %p1335_p11, 1, 0 }
  0x17   : > { %s1652_s10 = scalar_select %p1339_p12, 1, 0 }
  0x18   : > { %s1654_s11 = scalar_select %p1343_p13, 1, 0 }
  0x19   : > { %1653 = sst [smem:[#allocation17_spill]] %s1652_s10  ;;  %p952_p1 = pneg %p1343_p13 }
  0x1a   : > { %s205_s13 = sshll.u32 %s1236_s12, 4  ;;  %s1237_s15 = smov [#allocation7]   ;;  %s206_s13 = int_to_ptr.vmem [resolvable:$true] %s205_s13 }
  0x1b   : > { %p1351_p2 = pnand %p952_p1, %p1640_p4  ;;  %s218_s16 = sshll.u32 %s1237_s15, 4  ;;  %s219_s16 = int_to_ptr.vmem [resolvable:$true] %s218_s16 }
  0x1c   : > { %s1044_s19 = scalar_lea.hbm %s1634_s1, 256 }
  0x1d   : > { %p1045_p7 = scmp.ne.s32.totalorder %s1634_s1, %s1044_s19  ;;  %p1046_p8 = pneg %p1351_p2 }
  0x1e   : > { %p1051_p1 = scmp.lt.u32.totalorder %s1044_s19, %s1634_s1 }
  0x1f   : > { %p1047_p9 = pnand %p1046_p8, %p1045_p7 }
  0x21   : > { %p1048_p10 = pneg %p1047_p9 }
  0x23   : > { %p1053_p0 = pnand %p1051_p1, %p1048_p10 }
  0x25   : > { %1056 = shalt.err (!%p1053_p0)
}
  0x26   : > { %s1057_s12 = scalar_lea.vmem %s206_s13, 256  ;;  %p1065_p11 = scmp.lt.s32.totalorder %s206_s13, %s206_s13 }
  0x27   : > { %p1058_p4 = scmp.ne.s32.totalorder %s206_s13, %s1057_s12  ;;  %p1066_p6 = scmp.lt.s32.totalorder %s1057_s12, %s1057_s12 }
  0x29   : > { %p1060_p3 = pnand %p1058_p4, %p1046_p8  ;;  %p1067_p13 = por %p1066_p6, %p1065_p11 }
  0x2b   : > { %p1061_p12 = pneg %p1060_p3 }
  0x2d   : > { %p1068_p5 = pnand %p1067_p13, %p1061_p12 }
  0x2f   : > { %1071 = shalt.err (!%p1068_p5)
}
  0x30   : > { %s1238_s15 = smov 64   ;;  %s1239_s17 = smov 4  }
  0x31   : > { %955 = dma.hbm_to_vmem [thread:$0]  (!%p1351_p2), %s1634_s1, 256, %s206_s13, [#allocation6], %s1238_s15, %s1238_s15, %s1239_s17  }
  0x32   : > { %s1383_s20 = sand.u32 1, %s1230_s23   ;;  %s1072_s29 = scalar_lea.hbm %s1635_s2, 256 }
  0x33   : > { %p1073_p4 = scmp.ne.s32.totalorder %s1635_s2, %s1072_s29  ;;  %p1079_p11 = scmp.lt.u32.totalorder %s1072_s29, %s1635_s2 }
  0x35   : > { %p1075_p5 = pnand %p1073_p4, %p1046_p8 }
  0x37   : > { %p1076_p6 = pneg %p1075_p5 }
  0x39   : > { %p1081_p12 = pnand %p1079_p11, %p1076_p6 }
  0x3b   : > { %1084 = shalt.err (!%p1081_p12)
}
  0x3c   : > { %s1085_s13 = scalar_lea.vmem %s219_s16, 256  ;;  %p1093_p7 = scmp.lt.s32.totalorder %s219_s16, %s219_s16 }
  0x3d   : > { %p1086_p13 = scmp.ne.s32.totalorder %s219_s16, %s1085_s13  ;;  %p1094_p9 = scmp.lt.s32.totalorder %s1085_s13, %s1085_s13 }
  0x3f   : > { %p1088_p0 = pnand %p1086_p13, %p1046_p8  ;;  %p1095_p10 = por %p1094_p9, %p1093_p7 }
  0x41   : > { %p1089_p3 = pneg %p1088_p0 }
  0x43   : > { %p1096_p1 = pnand %p1095_p10, %p1089_p3 }
  0x45   : > { %1099 = shalt.err (!%p1096_p1)
}
  0x46   : > { %958 = dma.hbm_to_vmem [thread:$0]  (!%p1351_p2), %s1635_s2, 256, %s219_s16, [#allocation6], %s1238_s15, %s1238_s15, %s1239_s17  }
  0x47   : > { %s851_s10 = sshll.u32 %s1383_s20, 3  ;;  %s882_s18 = sshll.u32 %s1234_s24, 7 }
  0x48   : > { %s1413_s28 = scalar_lea.hbm %s1633_s0, %s882_s18  ;;  %s242_s14 = scalar_lea.vmem [#allocation2], %s851_s10 }
  0x49   : > { %s249_s29 = sshll.u32 %s242_s14, 4  ;;  %p1656_p8 = scmp.ne.s32.totalorder %s1649_s7, 0  ;;  %s1415_s29 = int_to_ptr.vmem [resolvable:$true] %s249_s29 }
  0x4a   : > { %p1657_p4 = scmp.lt.s32.totalorder %s1234_s24, 2  ;;  %s854_s16 = sshll.u32 %s1383_s20, 4 }
  0x4b   : > { %s239_s13 = scalar_lea.sflag [#allocation3], %s1383_s20  ;;  %s1100_s27 = scalar_lea.hbm %s1413_s28, 128 }
  0x4c   : > { %p1421_p5 = pnand %p1657_p4, %p1656_p8  ;;  %p1101_p2 = scmp.ne.s32.totalorder %s1413_s28, %s1100_s27 }
  0x4d   : > { %s1105_s7 = scalar_lea.hbm %s1633_s0, 256  ;;  %p1106_p13 = scmp.lt.u32.totalorder %s1413_s28, %s1633_s0 }
  0x4e   : > { %p1102_p6 = pneg %p1421_p5  ;;  %p1107_p0 = scmp.lt.u32.totalorder %s1105_s7, %s1100_s27 }
  0x4f   : > { %p1109_p7 = scmp.lt.u32.totalorder %s1100_s27, %s1413_s28 }
  0x50   : > { %p1103_p11 = pnand %p1102_p6, %p1101_p2  ;;  %p1108_p3 = por %p1107_p0, %p1106_p13 }
  0x52   : > { %p1104_p12 = pneg %p1103_p11  ;;  %p1110_p9 = por %p1109_p7, %p1108_p3 }
  0x54   : > { %p1111_p10 = pnand %p1110_p9, %p1104_p12 }
  0x56   : > { %1114 = shalt.err (!%p1111_p10)
}
  0x57   : > { %s1115_s26 = scalar_lea.vmem %s1415_s29, 128  ;;  %s1240_s14 = smov [#allocation2]  }
  0x58   : > { %p1116_p1 = scmp.ne.s32.totalorder %s1415_s29, %s1115_s26  ;;  %s1120_s30 = sshll.u32 %s1240_s14, 4  ;;  %s1121_s30 = int_to_ptr.vmem [resolvable:$false] %s1120_s30 }
  0x59   : > { %s1122_s10 = scalar_lea.vmem %s1121_s30, 256  ;;  %p1123_p2 = scmp.lt.s32.totalorder %s1415_s29, %s1121_s30 }
  0x5a   : > { %p1118_p8 = pnand %p1116_p1, %p1102_p6  ;;  %p1124_p11 = scmp.lt.s32.totalorder %s1122_s10, %s1115_s26 }
  0x5c   : > { %p1119_p4 = pneg %p1118_p8  ;;  %p1125_p13 = por %p1124_p11, %p1123_p2 }
  0x5e   : > { %p1126_p0 = pnand %p1125_p13, %p1119_p4 }
  0x60   : > { %1129 = shalt.err (!%p1126_p0)
}
  0x61   : > { %962 = dma.hbm_to_vmem [thread:$0]  (!%p1421_p5), %s1413_s28, 128, %s1415_s29, %s239_s13, %s1238_s15, %s1238_s15, %s1239_s17  }
  0x62   : > { %s883_s27 = sshll.u32 %s1234_s24, 8  ;;  %s263_s7 = scalar_lea.vmem [#allocation8], %s854_s16 }
  0x63   : > { %s270_s18 = sshll.u32 %s263_s7, 4  ;;  %s1463_s14 = scalar_lea.hbm %s1638_s5, %s883_s27  ;;  %s1465_s18 = int_to_ptr.vmem [resolvable:$true] %s270_s18 }
  0x64   : > { %s260_s30 = scalar_lea.sflag [#allocation9], %s1383_s20  ;;  %s1130_s10 = scalar_lea.hbm %s1463_s14, 256 }
  0x65   : > { %p1131_p12 = scmp.ne.s32.totalorder %s1463_s14, %s1130_s10  ;;  %s1135_s16 = scalar_lea.hbm %s1638_s5, 512 }
  0x66   : > { %p1136_p9 = scmp.lt.u32.totalorder %s1463_s14, %s1638_s5  ;;  %p1137_p10 = scmp.lt.u32.totalorder %s1135_s16, %s1130_s10 }
  0x67   : > { %p1133_p3 = pnand %p1131_p12, %p1102_p6  ;;  %p1139_p8 = scmp.lt.u32.totalorder %s1130_s10, %s1463_s14 }
  0x68   : > { %p1138_p1 = por %p1137_p10, %p1136_p9 }
  0x69   : > { %p1134_p7 = pneg %p1133_p3 }
  0x6a   : > { %p1140_p4 = por %p1139_p8, %p1138_p1 }
  0x6c   : > { %p1141_p2 = pnand %p1140_p4, %p1134_p7 }
  0x6e   : > { %1144 = shalt.err (!%p1141_p2)
}
  0x6f   : > { %s1145_s7 = scalar_lea.vmem %s1465_s18, 256  ;;  %s1241_s19 = smov [#allocation8]  }
  0x70   : > { %p1146_p11 = scmp.ne.s32.totalorder %s1465_s18, %s1145_s7  ;;  %s1150_s26 = sshll.u32 %s1241_s19, 4  ;;  %s1151_s26 = int_to_ptr.vmem [resolvable:$false] %s1150_s26 }
  0x71   : > { %s1152_s28 = scalar_lea.vmem %s1151_s26, 512  ;;  %p1153_p12 = scmp.lt.s32.totalorder %s1465_s18, %s1151_s26 }
  0x72   : > { %p1148_p13 = pnand %p1146_p11, %p1102_p6  ;;  %p1154_p3 = scmp.lt.s32.totalorder %s1152_s28, %s1145_s7 }
  0x74   : > { %p1149_p0 = pneg %p1148_p13  ;;  %p1155_p9 = por %p1154_p3, %p1153_p12 }
  0x76   : > { %p1156_p10 = pnand %p1155_p9, %p1149_p0 }
  0x78   : > { %1159 = shalt.err (!%p1156_p10)
}
  0x79   : > { %965 = dma.hbm_to_vmem [thread:$0]  (!%p1421_p5), %s1463_s14, 256, %s1465_s18, %s260_s30, %s1238_s15, %s1238_s15, %s1239_s17  }
  0x7a   : > { %p1659_p6 = scmp.ne.s32.totalorder %s1654_s11, 0 }
  0x7b   : > { %s1499_s10 = sand.u32 (!%p1659_p6), 1, %s1226_s22   ;;  %p1660_p7 = scmp.ne.s32.totalorder (!%p1659_p6), %s1650_s8, 0 }
  0x7c   : > { %282 = sbr.rel (%p1659_p6) target bundleno = 1535 (0x5ff), region = 44  ;;  %s858_s29 = sshll.u32 (!%p1659_p6), %s1499_s10, 3 }
  0x7d   : > { %s285_s12 = scalar_lea.sflag (!%p1659_p6), [#allocation3], %s1499_s10  ;;  %s288_s16 = scalar_lea.vmem (!%p1659_p6), [#allocation2], %s858_s29 }
  0x83   : > { %1205 = dma.done.wait (%p1660_p7), %s285_s12, 128  }
  0x84   : > { %1207 = vsyncadd (%p1660_p7), %s285_s12, 4294967168  ;;  %p1661_p5 = scmp.eq.s32.totalorder %s1304_s25, 0 }
  0x86   : > { %1209 = dma.done.wait (%p1661_p5), [#allocation6], 512   ;;  %p1662_p1 = pmov %p1661_p5 }
  0x87   : > { %s861_s11 = sshll.u32 %s1499_s10, 4  ;;  %s302_s15 = scalar_lea.sflag [#allocation9], %s1499_s10 }
  0x88   : > { %1211 = vsyncadd (%p1662_p1), [#allocation6], 4294966784  ;;  %s1515_s17 = scalar_lea.vmem [#allocation8], %s861_s11 }
  0x89   : > { %1213 = dma.done.wait (%p1660_p7), %s302_s15, 256  }
  0x8a   : > { %1215 = vsyncadd (%p1660_p7), %s302_s15, 4294967040  ;;  %v1242_v0 = vmov 0.0   ;;  %vm1243_vm0 = vmmov 0   ;;  %v1018_v1 = vld [vmem:[#allocation5] sm:$0xff]   ;;  %v1019_v2 = vld [vmem:[#allocation5 + $0x8] sm:$0xff]   ;;  %vm363_vm1 = vcmask 261120  }
  0x8b   : > { %908 = vmatprep.subr.bf16.mxu0 %v1242_v0  ;;  %912 = vmatprep.mubr.msk.bf16.mxu0 %vm1243_vm0, %v1242_v0  ;;  %v1524_v3 = vld [vmem:[%s288_s16] sm:$0xff]   ;;  %vm423_vm2 = vcmask 523520   ;;  %s1244_s18 = smov 96   ;;  %vm476_vm3 = vcmask 130048   ;;  %v888_v45 = vld [vmem:[%s1515_s17] sm:$0xff]   ;;  %s1245_s14 = smov 64  }
  0x8c   : > { %909 = vmatpush3.bf16.msra.mxu0 %v1018_v1  ;;  %v867_v32 = vld [vmem:[%s1637_s4] ss:$0 sm:$0xff]  ;;  %v889_v46 = vunpack.c.l.bf16 %v888_v45  ;;  %v890_v48 = vunpack.c.h.bf16 %v888_v45  ;;  %v895_v49 = vld [vmem:[%s1515_s17 + $0x8] sm:$0xff]   ;;  %v702_v45 = vunpack.c.l.bf16 %v1524_v3  ;;  %s886_s27 = sshll.u32 %s1304_s25, 7  ;;  %vm714_vm4 = vcmask 257024   ;;  %s338_s7 = scalar_lea.vmem [#allocation10], %s858_s29 }
  0x8d   : > { %910 = vmatprep.subr.bf16.mxu0 %v1242_v0  ;;  %v893_v54 = vunpack.c.l.bf16 %v895_v49  ;;  %v894_v58 = vunpack.c.h.bf16 %v895_v49  ;;  %v703_v49 = vunpack.c.h.bf16 %v1524_v3  ;;  %s731_s19 = sshll.u32 %s338_s7, 4  ;;  %s1585_s12 = scalar_lea.hbm %s1639_s6, %s886_s27  ;;  %s1587_s19 = int_to_ptr.vmem [resolvable:$true] %s731_s19 }
  0x8e   : > { %s718_s25 = scalar_lea.sflag [#allocation4], %s1499_s10  ;;  %s1160_s16 = scalar_lea.vmem %s1587_s19, 128 }
  0x8f   : > { %p1161_p8 = scmp.ne.s32.totalorder %s1587_s19, %s1160_s16  ;;  %p1663_p4 = scmp.ne.s32.totalorder %s1651_s9, 0 }
  0x90   : > { %911 = vmatpush3.bf16.msra.mxu0 %v1019_v2  ;;  %s1246_s29 = smov [#allocation10]  }
  0x91   : > { %930 = vmatprep.subr.bf16.mxu0 %v1242_v0  ;;  %p1162_p2 = pnand %p1161_p8, %p1663_p4  ;;  %s1164_s11 = sshll.u32 %s1246_s29, 4  ;;  %s1165_s11 = int_to_ptr.vmem [resolvable:$false] %s1164_s11 }
  0x92   : > { %s1166_s15 = scalar_lea.vmem %s1165_s11, 256  ;;  %p1167_p13 = scmp.lt.s32.totalorder %s1587_s19, %s1165_s11 }
  0x93   : > { %913 = vmatmul.mubr.msk.bf16.vlgmr.msra.gmra.mrb[0].mxu0 %vm363_vm1, %v1524_v3  ;;  %p1163_p11 = pneg %p1162_p2  ;;  %p1168_p0 = scmp.lt.s32.totalorder %s1166_s15, %s1160_s16 }
  0x94   : > { %934 = vmatprep.mubr.msk.bf16.mxu0 %vm1243_vm0, %v1242_v0 }
  0x95   : > { %p1169_p12 = por %p1168_p0, %p1167_p13 }
  0x97   : > { %p1170_p3 = pnand %p1169_p12, %p1163_p11 }
 0x166   : > { %v1532_v4 = vpop.f32.mrb[0].mxu0 }
 0x167   : > { %v408_v5 = vmul.f32 %v1532_v4, %v1532_v4  ;;  %v914_v6 = vpop.f32.mrb[1].mxu0 }
 0x168   : > { %v1536_v7 = vpop.f32.mrb[2].mxu0 }
 0x169   : > { %v409_v8 = vmul.f32 %v1536_v7, %v1536_v7  ;;  %v915_v9 = vpop.f32.mrb[3].mxu0  ;;  %v576_v10 = vpack.c.bf16 %v1536_v7, %v1532_v4  ;;  %v410_v11 = vsel %vm363_vm1, %v408_v5, 0.0  ;;  %v424_v12 = vsel %vm423_vm2, %v408_v5, 0.0 }
 0x16b   : > { %v411_v13 = vsel %vm363_vm1, %v409_v8, 0.0  ;;  %v425_v14 = vsel %vm423_vm2, %v409_v8, 0.0 }
 0x16c   : > { %v412_v15 = vadd.f32 %v411_v13, %v410_v11  ;;  %v426_v16 = vadd.f32 %v425_v14, %v424_v12 }
 0x16e   : > { %v413_v17 = vrot.slane %v412_v15, 4  ;;  %v427_v18 = vrot.slane %v426_v16, 4 }
 0x170   : > { %v414_v19 = vadd.f32 %v413_v17, %v412_v15  ;;  %v428_v20 = vadd.f32 %v427_v18, %v426_v16 }
 0x172   : > { %v415_v21 = vrot.slane %v414_v19, 2  ;;  %v429_v22 = vrot.slane %v428_v20, 2 }
 0x174   : > { %v416_v23 = vadd.f32 %v415_v21, %v414_v19  ;;  %v430_v24 = vadd.f32 %v429_v22, %v428_v20 }
 0x176   : > { %v417_v25 = vrot.slane %v416_v23, 1  ;;  %v431_v26 = vrot.slane %v430_v24, 1 }
 0x178   : > { %v418_v27 = vadd.f32 %v417_v25, %v416_v23  ;;  %v432_v28 = vadd.f32 %v431_v26, %v430_v24  ;;  %v1021_v24 = vld [vmem:[#allocation7] sm:$0xff]  }
 0x179   : > { %931 = vmatpush3.bf16.msra.mxu0 %v1021_v24 }
 0x17a   : > { %v419_v29 = vmax.f32 %v418_v27, 1e-24  ;;  %v433_v30 = vmax.f32 %v432_v28, 1e-24  ;;  %932 = vmatprep.subr.bf16.mxu0 %v1242_v0 }
 0x17c   : > { %1024 = vrsqrt.f32 %v419_v29 }
 0x17d   : > { %1026 = vrsqrt.f32 %v433_v30 }
 0x186   : > { %v1025_v31 = vpop.eup %1024 }
 0x187   : > { %v1027_v33 = vpop.eup %1026  ;;  %v421_v34 = vmul.f32 %v1025_v31, %v1532_v4  ;;  %v422_v35 = vmul.f32 %v1025_v31, %v1536_v7 }
 0x188   : > { %v435_v36 = vmul.f32 %v1027_v33, %v1532_v4  ;;  %v436_v37 = vmul.f32 %v1027_v33, %v1536_v7 }
 0x189   : > { %v444_v38 = vmul.f32 %v867_v32, %v421_v34  ;;  %v445_v39 = vmul.f32 %v867_v32, %v422_v35 }
 0x18a   : > { %v447_v40 = vpack.c.bf16 %v436_v37, %v435_v36 }
 0x18b   : > { %v446_v41 = vpack.c.bf16 %v445_v39, %v444_v38  ;;  %v1022_v39 = vld [vmem:[#allocation7 + $0x8] sm:$0xff]  }
 0x18c   : > { %473 = vrot.lane.b32.xlu0 %v447_v40, %s1244_s18  ;;  %933 = vmatpush3.bf16.msra.mxu0 %v1022_v39 }
 0x1aa   : > { %456 = vxpose.xlu0.c.b16.start.end [1/1] (short) (narrow) %v446_v41, 32 }
 0x1fe   : > { %v474_v42 = vpop.permute.xlu0 %473 }
 0x1ff   : > { %916 = vmatprep.subr.bf16.mxu1 %v474_v42 }
 0x200   : > { %917 = vmatpush3.bf16.msra.mxu1 %v474_v42 }
 0x201   : > { %922 = vmatprep.subr.bf16.mxu1 %v1242_v0 }
 0x210   : > { %v464_v43 = vpop.trf.xlu0 }
 0x211   : > { %918 = vmatprep.mubr.msk.bf16.mxu1 %vm476_vm3, %v464_v43 }
 0x214   : > { %v465_v44 = vpop.trf.xlu0 }
 0x215   : > { %919 = vmatmul.mubr.msk.bf16.vlgmr.msra.gmra.mrb[0].mxu1 %vm476_vm3, %v465_v44 }
 0x216   : > { %926 = vmatprep.mubr.msk.bf16.mxu1 %vm1243_vm0, %v1242_v0 }
 0x2e8   : > { %v920_v47 = vpop.f32.mrb[0].mxu1 }
 0x2e9   : > { %v517_v50 = vpop.f32.mrb[1].mxu1  ;;  %v526_v57 = vadd.f32 %v920_v47, %v893_v54 }
 0x2ea   : > { %v518_v51 = vadd.f32 %v889_v46, %v517_v50  ;;  %v921_v52 = vpop.f32.mrb[2].mxu1 }
 0x2eb   : > { %v520_v53 = vpop.f32.mrb[3].mxu1  ;;  %v529_v60 = vadd.f32 %v921_v52, %v894_v58  ;;  %v538_v61 = vsel %vm363_vm1, %v526_v57, -inf }
 0x2ec   : > { %v521_v55 = vadd.f32 %v890_v48, %v520_v53  ;;  %v532_v56 = vsel %vm363_vm1, %v518_v51, -inf }
 0x2ed   : > { %533 = vmax.xlane.f32.xlu1 %v532_v56  ;;  %v541_v62 = vsel %vm363_vm1, %v529_v60, -inf }
 0x2ee   : > { %v535_v59 = vsel %vm363_vm1, %v521_v55, -inf }
 0x2f1   : > { %536 = vmax.xlane.f32.xlu1 %v535_v59 }
 0x2f5   : > { %539 = vmax.xlane.f32.xlu1 %v538_v61 }
 0x2f9   : > { %542 = vmax.xlane.f32.xlu1 %v541_v62 }
 0x37a   : > { %v534_v63 = vpop.xlane.xlu1 %533 }
 0x37b   : > { %v544_v1 = vsub.f32 %v518_v51, %v534_v63 }
 0x37d   : > { %v548_v2 = vmul.f32 1.442695, %v544_v1 }
 0x37e   : > { %v537_v5 = vpop.xlane.xlu1 %536 }
 0x37f   : > { %1028 = vpow2.f32 %v548_v2  ;;  %v545_v6 = vsub.f32 %v521_v55, %v537_v5 }
 0x381   : > { %v550_v8 = vmul.f32 1.442695, %v545_v6 }
 0x382   : > { %v540_v9 = vpop.xlane.xlu1 %539 }
 0x383   : > { %1030 = vpow2.f32 %v550_v8  ;;  %v546_v11 = vsub.f32 %v526_v57, %v540_v9 }
 0x385   : > { %v552_v12 = vmul.f32 1.442695, %v546_v11 }
 0x386   : > { %v543_v13 = vpop.xlane.xlu1 %542 }
 0x387   : > { %1032 = vpow2.f32 %v552_v12  ;;  %v547_v14 = vsub.f32 %v529_v60, %v543_v13 }
 0x389   : > { %v1029_v15 = vpop.eup %1028  ;;  %v554_v16 = vmul.f32 1.442695, %v547_v14 }
 0x38a   : > { %v556_v17 = vsel %vm363_vm1, %v1029_v15, 0.0 }
 0x38b   : > { %1034 = vpow2.f32 %v554_v16  ;;  %557 = vadd.xlane.f32.xlu1 %v556_v17 }
 0x38d   : > { %v1031_v18 = vpop.eup %1030 }
 0x38e   : > { %v559_v19 = vsel %vm363_vm1, %v1031_v18, 0.0 }
 0x38f   : > { %560 = vadd.xlane.f32.xlu1 %v559_v19 }
 0x391   : > { %v1033_v20 = vpop.eup %1032 }
 0x392   : > { %v562_v21 = vsel %vm363_vm1, %v1033_v20, 0.0 }
 0x393   : > { %563 = vadd.xlane.f32.xlu1 %v562_v21 }
 0x395   : > { %v1035_v22 = vpop.eup %1034 }
 0x396   : > { %v565_v23 = vsel %vm363_vm1, %v1035_v22, 0.0 }
 0x397   : > { %566 = vadd.xlane.f32.xlu1 %v565_v23 }
 0x3a8   : > { %580 = vrot.lane.b32.xlu1 %v576_v10, %s1245_s14 }
 0x418   : > { %v558_v25 = vpop.xlane.xlu1 %557 }
 0x419   : > { %1036 = vrcp.f32 %v558_v25 }
 0x41c   : > { %v561_v26 = vpop.xlane.xlu1 %560 }
 0x41d   : > { %1038 = vrcp.f32 %v561_v26 }
 0x420   : > { %v564_v27 = vpop.xlane.xlu1 %563 }
 0x421   : > { %1040 = vrcp.f32 %v564_v27 }
 0x423   : > { %v1037_v29 = vpop.eup %1036 }
 0x424   : > { %v567_v28 = vpop.xlane.xlu1 %566  ;;  %v572_v31 = vmul.f32 %v1037_v29, %v1029_v15 }
 0x425   : > { %1042 = vrcp.f32 %v567_v28 }
 0x427   : > { %v1039_v30 = vpop.eup %1038 }
 0x428   : > { %v573_v32 = vmul.f32 %v1039_v30, %v1031_v18  ;;  %v581_v38 = vpop.permute.xlu1 %580 }
 0x42a   : > { %v577_v33 = vpack.c.bf16 %v573_v32, %v572_v31 }
 0x42b   : > { %v1041_v7 = vpop.eup %1040 }
 0x42c   : > { %v586_v4 = vsel %vm363_vm1, %v577_v33, 0  ;;  %v574_v34 = vmul.f32 %v1041_v7, %v1033_v20 }
 0x42d   : > { %923 = vmatpush3.bf16.xpose.msra.mxu1 %v586_v4 }
 0x42e   : > { %924 = vmatprep.subr.bf16.mxu1 %v1242_v0  ;;  %v874_v0 = vld [vmem:[%s1636_s3] ss:$0 sm:$0xff] }
 0x42f   : > { %v1043_v10 = vpop.eup %1042 }
 0x430   : > { %v575_v35 = vmul.f32 %v1043_v10, %v1035_v22 }
 0x432   : > { %v578_v36 = vpack.c.bf16 %v575_v35, %v574_v34 }
 0x434   : > { %v589_v37 = vsel %vm363_vm1, %v578_v36, 0 }
 0x435   : > { %925 = vmatpush3.bf16.xpose.msra.mxu1 %v589_v37 }
 0x43c   : > { %927 = vmatmul.mubr.msk.bf16.vlgmr.msra.gmra.mrb[4].mxu1 %vm363_vm1, %v581_v38 }
 0x50f   : > { %v625_v40 = vpop.f32.mrb[4].mxu1 }
 0x510   : > { %v928_v41 = vpop.f32.mrb[5].mxu1 }
 0x511   : > { %v628_v42 = vpop.f32.mrb[6].mxu1 }
 0x512   : > { %v632_v43 = vpack.c.bf16 %v628_v42, %v625_v40  ;;  %v929_v44 = vpop.f32.mrb[7].mxu1 }
 0x514   : > { %935 = vmatmul.mubr.msk.bf16.vlgmr.msra.gmra.mrb[4].mxu0 %vm363_vm1, %v632_v43 }
 0x5e7   : > { %v686_v46 = vpop.f32.mrb[4].mxu0 }
 0x5e8   : > { %v700_v47 = vadd.f32 %v874_v0, %v686_v46  ;;  %v936_v48 = vpop.f32.mrb[5].mxu0 }
 0x5e9   : > { %v689_v50 = vpop.f32.mrb[6].mxu0 }
 0x5ea   : > { %v704_v51 = vadd.f32 %v702_v45, %v700_v47  ;;  %v701_v52 = vadd.f32 %v874_v0, %v689_v50  ;;  %v937_v53 = vpop.f32.mrb[7].mxu0 }
 0x5ec   : > { %v884_v54 = vpack.c.bf16 %v704_v51, %v704_v51  ;;  %v705_v55 = vadd.f32 %v703_v49, %v701_v52 }
 0x5ee   : > { %715 = vst.msk [vmem:[%s338_s7] sm:$0xf] %vm714_vm4, %v884_v54  ;;  %v885_v3 = vpack.c.bf16 %v705_v55, %v705_v55 }
 0x5f0   : > { %716 = vst.msk [vmem:[%s338_s7 + $0x4] sm:$0xf] %vm714_vm4, %v885_v3 }
 0x5f1   : > { %1173 = shalt.err (!%p1170_p3)
}
 0x5f2   : > { %s1174_s17 = scalar_lea.hbm %s1585_s12, 128  ;;  %s1178_s18 = scalar_lea.hbm %s1639_s6, 256 }
 0x5f3   : > { %p1175_p9 = scmp.ne.s32.totalorder %s1585_s12, %s1174_s17  ;;  %p1179_p7 = scmp.lt.u32.totalorder %s1585_s12, %s1639_s6 }
 0x5f4   : > { %p1180_p5 = scmp.lt.u32.totalorder %s1178_s18, %s1174_s17  ;;  %p1182_p8 = scmp.lt.u32.totalorder %s1174_s17, %s1585_s12 }
 0x5f5   : > { %p1176_p10 = pnand %p1175_p9, %p1663_p4 }
 0x5f6   : > { %p1181_p1 = por %p1180_p5, %p1179_p7 }
 0x5f7   : > { %p1177_p6 = pneg %p1176_p10 }
 0x5f8   : > { %p1183_p2 = por %p1182_p8, %p1181_p1 }
 0x5fa   : > { %p1184_p11 = pnand %p1183_p2, %p1177_p6 }
 0x5fc   : > { %1187 = shalt.err (!%p1184_p11)
}
 0x5fd   : > { %s1247_s27 = smov 4  }
 0x5fe   : > { %950 = dma.vmem_to_hbm [thread:$0]  (%p1663_p4), %s1587_s19, 128, %s1585_s12, %s718_s25, %s1245_s14, %s1245_s14, %s1247_s27  }
 0x5ff PF: > { %s1664_s7 = sld [smem:[#allocation17_spill]]  ;;  %s746_s26 = sand.u32 1, %s1222_s21  }
 0x600   : > { %p1666_p0 = scmp.ge.s32.totalorder %s1234_s24, 2  ;;  %s747_s28 = scalar_lea.sflag [#allocation4], %s746_s26 }
 0x605   : > { %p1665_p13 = scmp.ne.s32.totalorder %s1664_s7, 0 }
 0x607   : > { %p967_p12 = pnand %p1666_p0, %p1665_p13 }
 0x609   : > { %1217 = dma.done.wait (!%p967_p12), %s747_s28, 128  }
 0x60a   : > { %1219 = vsyncadd (!%p967_p12), %s747_s28, 4294967168  ;;  %s1667_s24 = sld [smem:[#allocation15_spill]]  ;;  %s1668_s9 = sld [smem:[#allocation16_spill]] }
 0x60b   : > { %s1669_s21 = smov %s1226_s22  ;;  %s1670_s22 = smov %s1230_s23 }
 0x610   : > { %p23_p3 = scmp.ge.s32.totalorder %s1667_s24, 4   ;;  %s1671_s23 = smov %s1668_s9 }
 0x612   :  { %25 = sbr.rel (!%p23_p3) target bundleno = 8 (0x8), region = 110 }
 0x619   :  { %752 = vsyncpa [#allocation3], 1 }
 0x61a   :  { %754 = vsyncpa [#allocation3 + $0x1], 1 }
 0x61b   :  { %755 = vsyncpa [#allocation6], 1 }
 0x61c   :  { %756 = vsyncpa [#allocation9], 1 }
 0x61d   :  { %758 = vsyncpa [#allocation9 + $0x1], 1 }
 0x61e   :  { %759 = vsyncpa [#allocation4], 1 }
 0x61f   :  { %761 = vsyncpa [#allocation4 + $0x1], 1 }

</bundles_post_ra>
